<compile_context>
chip_gen: v5e
topology: v5e:2x2
jax: 0.10.0
libtpu: 0.0.40
codegen_flags: <defaults>
</compile_context>

<pallas_src>
import functools
from typing import NamedTuple

import numpy as np
import jax
import jax.numpy as jnp
from jax.experimental import pallas as pl
from jax.experimental.pallas import tpu as pltpu

_LANE = 128


def _round_up(n, m):
    return (n + m - 1) // m * m


def _device_kind():
    try:
        return jax.devices()[0].device_kind.lower()
    except Exception:  # pragma: no cover - defensive
        return ""


class ActorParams(NamedTuple):
    w1: jax.Array
    b1: jax.Array
    w2: jax.Array
    b2: jax.Array
    w3: jax.Array
    b3: jax.Array


def prepare_actor_params(w1, b1, w2, b2, w3, b3, *, operand_dtype=jnp.bfloat16):
    """One-time parameter preparation.  Call ONCE and reuse across forwards.

    w_i: [in, out] (already transposed from PyTorch's [out, in]); b_i: [out].
    Pads hidden1/hidden2 and the output axis to multiples of 128 lanes with zeros
    (exactly preserves the math: padded hidden units are ReLU(0+0)=0 and padded
    output columns are sliced off), casts MXU operands to `operand_dtype`, keeps
    biases in f32.  Returns (ActorParams, nb_actions).
    """
    def as_row(b):
        return jnp.reshape(jnp.asarray(b, jnp.float32), (1, -1))

    b1, b2, b3 = as_row(b1), as_row(b2), as_row(b3)
    w1, w2, w3 = jnp.asarray(w1), jnp.asarray(w2), jnp.asarray(w3)

    nb_states, hidden1 = w1.shape
    hidden2 = w2.shape[1]
    nb_actions = w3.shape[1]
    h1p = _round_up(hidden1, _LANE)
    h2p = _round_up(hidden2, _LANE)
    outp = _round_up(nb_actions, _LANE)

    def pad_to(a, shape):
        return jnp.pad(a, tuple((0, t - s) for s, t in zip(a.shape, shape)))

    w1p = pad_to(w1, (nb_states, h1p)).astype(operand_dtype)
    b1p = pad_to(b1, (1, h1p))
    w2p = pad_to(w2, (h1p, h2p)).astype(operand_dtype)
    b2p = pad_to(b2, (1, h2p))
    w3p = pad_to(w3, (h2p, outp)).astype(operand_dtype)
    b3p = pad_to(b3, (1, outp))
    return ActorParams(w1p, b1p, w2p, b2p, w3p, b3p), nb_actions


def _actor_kernel(x_ref, w1_ref, b1_ref, w2_ref, b2_ref, w3_ref, b3_ref, o_ref):
    # x arrives f32; cast to the MXU operand dtype in-kernel (cheap VPU pack hidden
    # under the matmul) instead of a separate XLA op with its own HBM round trip.
    x = x_ref[...].astype(w1_ref.dtype)

    h1 = jnp.dot(x, w1_ref[...], preferred_element_type=jnp.float32) + b1_ref[...]
    h1 = jnp.maximum(h1, 0.0)                                      # ReLU (f32)

    h2 = jnp.dot(h1.astype(w2_ref.dtype), w2_ref[...],
                 preferred_element_type=jnp.float32) + b2_ref[...]
    h2 = jnp.maximum(h2, 0.0)                                      # ReLU (f32)

    h3 = jnp.dot(h2.astype(w3_ref.dtype), w3_ref[...],
                 preferred_element_type=jnp.float32) + b3_ref[...]
    o_ref[...] = jax.nn.sigmoid(h3).astype(o_ref.dtype)            # Sigmoid (f32)


@functools.partial(
    jax.jit, static_argnames=("block_b", "nb_actions", "slice_output", "out_dtype"))
def _actor_forward_impl(x, w1, b1, w2, b2, w3, b3, *,
                        block_b, nb_actions, slice_output, out_dtype):
    B, nb_states = x.shape
    h1p = w1.shape[1]
    h2p = w2.shape[1]
    outp = w3.shape[1]          # lane-padded output width (multiple of 128)

    grid = (pl.cdiv(B, block_b),)   # ragged last block handled by Pallas (masked store)

    out = pl.pallas_call(
        _actor_kernel,
        out_shape=jax.ShapeDtypeStruct((B, outp), out_dtype),
        grid_spec=pl.GridSpec(
            grid=grid,
            in_specs=[
                # activations: tiled over batch
                pl.BlockSpec((block_b, nb_states), lambda i: (i, 0)),
                # weights / biases: whole array, constant index_map -> the pipeline
                # skips re-DMA when the block index is unchanged, so they are
                # fetched once and stay resident across grid steps.
                pl.BlockSpec((nb_states, h1p), lambda i: (0, 0)),
                pl.BlockSpec((1, h1p), lambda i: (0, 0)),
                pl.BlockSpec((h1p, h2p), lambda i: (0, 0)),
                pl.BlockSpec((1, h2p), lambda i: (0, 0)),
                pl.BlockSpec((h2p, outp), lambda i: (0, 0)),
                pl.BlockSpec((1, outp), lambda i: (0, 0)),
            ],
            out_specs=pl.BlockSpec((block_b, outp), lambda i: (i, 0)),
        ),
        compiler_params=pltpu.CompilerParams(
            dimension_semantics=("parallel",),   # shards batch steps across v7x's 2 TCs
        ),
    )(x, w1, b1, w2, b2, w3, b3)

    if slice_output:
        out = out[:, :nb_actions]
    return out


def _choose_block_b(B, operand_dtype):
    """Batch tile size: one full-batch block for small B; big sublane-packed tiles
    for large B; >=2 grid steps on v7x so both TensorCores get work."""
    sub = max(8, 32 // np.dtype(operand_dtype).itemsize)   # 16 rows/vreg for bf16
    kind = _device_kind()
    if "v7" in kind:
        num_cores, cap = 2, 256
    else:                       # v5e / v6e / unknown: 1 TC, bigger tiles win
        num_cores, cap = 1, 512
    if B <= cap and not (num_cores > 1 and B > 2 * sub):
        return B                # single block equal to the full batch dim
    return max(sub, min(cap, _round_up(pl.cdiv(B, num_cores), sub)))


def actor_forward(x, params: ActorParams, nb_actions, *,
                  slice_output=True, out_dtype=jnp.float32, block_b=None):
    """Actor forward.  x: [B, nb_states] f32; params from prepare_actor_params.

    Returns [B, nb_actions] (or the lane-padded [B, out_p] buffer when
    slice_output=False for throughput-critical callers).
    Note: distinct batch sizes trigger distinct compilations (shapes are static).
    """
    if block_b is None:
        block_b = _choose_block_b(x.shape[0], params.w1.dtype)
    return _actor_forward_impl(
        x, *params, block_b=int(block_b), nb_actions=int(nb_actions),
        slice_output=bool(slice_output), out_dtype=out_dtype)


def _init_linear(key, fan_in, fan_out):
    """torch.nn.Linear default init: U(-1/sqrt(in), 1/sqrt(in)).
    Returns W already transposed to [in, out] and bias as [out]."""
    kw, kb = jax.random.split(key)
    bound = 1.0 / float(np.sqrt(fan_in))
    w = jax.random.uniform(kw, (fan_in, fan_out), jnp.float32, -bound, bound)
    b = jax.random.uniform(kb, (fan_out,), jnp.float32, -bound, bound)
    return w, b


def actor_reference_f32(x, w1, b1, w2, b2, w3, b3):
    """Plain-JAX fp32 reference of the PyTorch forward (no bf16 casts)."""
    h = jnp.maximum(x @ w1 + b1[None, :], 0.0)
    h = jnp.maximum(h @ w2 + b2[None, :], 0.0)
    return jax.nn.sigmoid(h @ w3 + b3[None, :])


if __name__ == "__main__":
    # Small shapes consistent with the module: Actor(nb_states=24, nb_actions=4,
    # hidden1=400, hidden2=300) — module-default hidden sizes — batch = 16.
    B, nb_states, nb_actions = 16, 24, 4
    hidden1, hidden2 = 400, 300

    key = jax.random.PRNGKey(0)
    kx, k1, k2, k3 = jax.random.split(key, 4)

    x = jax.random.normal(kx, (B, nb_states), jnp.float32)
    w1, b1 = _init_linear(k1, nb_states, hidden1)
    w2, b2 = _init_linear(k2, hidden1, hidden2)
    w3, b3 = _init_linear(k3, hidden2, nb_actions)

    # One-time parameter preparation (hoisted out of the hot path).
    params, nbA = prepare_actor_params(w1, b1, w2, b2, w3, b3,
                                       operand_dtype=jnp.bfloat16)

    out = actor_forward(x, params, nbA)
    out = jax.block_until_ready(out)

    # Validate against a true fp32 reference (detects bf16 accuracy loss, not just
    # agreement with an identically-casted reference).
    ref = actor_reference_f32(x, w1, b1, w2, b2, w3, b3)
    assert out.shape == (B, nb_actions)
    max_err = float(jnp.max(jnp.abs(out - ref)))
    assert max_err < 2e-2, f"mismatch vs fp32 reference: max abs err {max_err}"

    print("KERNEL_OK")
</pallas_src>

<mosaic_0001>
module attributes {stable_mosaic.version = 11 : i64} {
  func.func @_actor_kernel(%arg0: i32, %arg1: memref<16x24xf32, #tpu.memory_space<vmem>>, %arg2: memref<24x512xbf16, #tpu.memory_space<vmem>>, %arg3: memref<1x512xf32, #tpu.memory_space<vmem>>, %arg4: memref<512x384xbf16, #tpu.memory_space<vmem>>, %arg5: memref<1x384xf32, #tpu.memory_space<vmem>>, %arg6: memref<384x128xbf16, #tpu.memory_space<vmem>>, %arg7: memref<1x128xf32, #tpu.memory_space<vmem>>, %arg8: memref<16x128xf32, #tpu.memory_space<vmem>>) attributes {dimension_semantics = [#tpu.dimension_semantics<parallel>], iteration_bounds = array<i64: 1>, scalar_prefetch = 0 : i64, scratch_operands = 0 : i64, tpu.core_type = #tpu.core_type<tc>, window_params = [{transform_indices = @transform_0, window_bounds = array<i64: 16, 24>}, {pipeline_mode = #tpu.pipeline_mode<synchronous>, transform_indices = @transform_1, window_bounds = array<i64: 24, 512>}, {pipeline_mode = #tpu.pipeline_mode<synchronous>, transform_indices = @transform_2, window_bounds = array<i64: 1, 512>}, {pipeline_mode = #tpu.pipeline_mode<synchronous>, transform_indices = @transform_3, window_bounds = array<i64: 512, 384>}, {pipeline_mode = #tpu.pipeline_mode<synchronous>, transform_indices = @transform_4, window_bounds = array<i64: 1, 384>}, {pipeline_mode = #tpu.pipeline_mode<synchronous>, transform_indices = @transform_5, window_bounds = array<i64: 384, 128>}, {pipeline_mode = #tpu.pipeline_mode<synchronous>, transform_indices = @transform_6, window_bounds = array<i64: 1, 128>}, {transform_indices = @transform_7, window_bounds = array<i64: 16, 128>}]} {
    %c0 = arith.constant 0 : index
    %c0_0 = arith.constant 0 : index
    %0 = vector.load %arg1[%c0, %c0_0] : memref<16x24xf32, #tpu.memory_space<vmem>>, vector<16x24xf32>
    %1 = arith.truncf %0 : vector<16x24xf32> to vector<16x24xbf16>
    %c0_1 = arith.constant 0 : index
    %c0_2 = arith.constant 0 : index
    %2 = vector.load %arg2[%c0_1, %c0_2] : memref<24x512xbf16, #tpu.memory_space<vmem>>, vector<24x512xbf16>
    %cst = arith.constant dense<0.000000e+00> : vector<16x512xf32>
    %3 = tpu.matmul %1, %2, %cst {dimension_numbers = #tpu.dot_dimension_numbers<[1], [0], [0], [1], [0, 0, 1, 1], [], []>} : vector<16x24xbf16>, vector<24x512xbf16>, vector<16x512xf32> -> vector<16x512xf32>
    %c0_3 = arith.constant 0 : index
    %c0_4 = arith.constant 0 : index
    %4 = vector.load %arg3[%c0_3, %c0_4] : memref<1x512xf32, #tpu.memory_space<vmem>>, vector<1x512xf32>
    %5 = vector.broadcast %4 : vector<1x512xf32> to vector<16x512xf32>
    %6 = arith.addf %3, %5 : vector<16x512xf32>
    %cst_5 = arith.constant 0.000000e+00 : f32
    %7 = vector.broadcast %cst_5 : f32 to vector<16x512xf32>
    %8 = arith.maximumf %6, %7 : vector<16x512xf32>
    %9 = arith.truncf %8 : vector<16x512xf32> to vector<16x512xbf16>
    %c0_6 = arith.constant 0 : index
    %c0_7 = arith.constant 0 : index
    %10 = vector.load %arg4[%c0_6, %c0_7] : memref<512x384xbf16, #tpu.memory_space<vmem>>, vector<512x384xbf16>
    %cst_8 = arith.constant dense<0.000000e+00> : vector<16x384xf32>
    %11 = tpu.matmul %9, %10, %cst_8 {dimension_numbers = #tpu.dot_dimension_numbers<[1], [0], [0], [1], [0, 0, 1, 1], [], []>} : vector<16x512xbf16>, vector<512x384xbf16>, vector<16x384xf32> -> vector<16x384xf32>
    %c0_9 = arith.constant 0 : index
    %c0_10 = arith.constant 0 : index
    %12 = vector.load %arg5[%c0_9, %c0_10] : memref<1x384xf32, #tpu.memory_space<vmem>>, vector<1x384xf32>
    %13 = vector.broadcast %12 : vector<1x384xf32> to vector<16x384xf32>
    %14 = arith.addf %11, %13 : vector<16x384xf32>
    %cst_11 = arith.constant 0.000000e+00 : f32
    %15 = vector.broadcast %cst_11 : f32 to vector<16x384xf32>
    %16 = arith.maximumf %14, %15 : vector<16x384xf32>
    %17 = arith.truncf %16 : vector<16x384xf32> to vector<16x384xbf16>
    %c0_12 = arith.constant 0 : index
    %c0_13 = arith.constant 0 : index
    %18 = vector.load %arg6[%c0_12, %c0_13] : memref<384x128xbf16, #tpu.memory_space<vmem>>, vector<384x128xbf16>
    %cst_14 = arith.constant dense<0.000000e+00> : vector<16x128xf32>
    %19 = tpu.matmul %17, %18, %cst_14 {dimension_numbers = #tpu.dot_dimension_numbers<[1], [0], [0], [1], [0, 0, 1, 1], [], []>} : vector<16x384xbf16>, vector<384x128xbf16>, vector<16x128xf32> -> vector<16x128xf32>
    %c0_15 = arith.constant 0 : index
    %c0_16 = arith.constant 0 : index
    %20 = vector.load %arg7[%c0_15, %c0_16] : memref<1x128xf32, #tpu.memory_space<vmem>>, vector<1x128xf32>
    %21 = vector.broadcast %20 : vector<1x128xf32> to vector<16x128xf32>
    %22 = arith.addf %19, %21 : vector<16x128xf32>
    %23 = arith.negf %22 : vector<16x128xf32>
    %24 = math.exp %23 : vector<16x128xf32>
    %cst_17 = arith.constant 1.000000e+00 : f32
    %25 = vector.broadcast %cst_17 : f32 to vector<16x128xf32>
    %26 = arith.addf %25, %24 : vector<16x128xf32>
    %27 = arith.divf %25, %26 : vector<16x128xf32>
    %c0_18 = arith.constant 0 : index
    %c0_19 = arith.constant 0 : index
    %28 = vector.load %arg8[%c0_18, %c0_19] : memref<16x128xf32, #tpu.memory_space<vmem>>, vector<16x128xf32>
    tpu.vector_store %arg8[%c0_18, %c0_19], %27 {strides = array<i32>} : memref<16x128xf32, #tpu.memory_space<vmem>>, vector<16x128xf32>,
    return
  }
  func.func @transform_0(%arg0: i32) -> (i32, i32) {
    %c0_i32 = arith.constant 0 : i32
    %c0_i32_0 = arith.constant 0 : i32
    return %arg0, %c0_i32 : i32, i32
  }
  func.func @transform_1(%arg0: i32) -> (i32, i32) {
    %c0_i32 = arith.constant 0 : i32
    %c0_i32_0 = arith.constant 0 : i32
    %c0_i32_1 = arith.constant 0 : i32
    return %c0_i32, %c0_i32_0 : i32, i32
  }
  func.func @transform_2(%arg0: i32) -> (i32, i32) {
    %c0_i32 = arith.constant 0 : i32
    %c0_i32_0 = arith.constant 0 : i32
    %c0_i32_1 = arith.constant 0 : i32
    return %c0_i32, %c0_i32_0 : i32, i32
  }
  func.func @transform_3(%arg0: i32) -> (i32, i32) {
    %c0_i32 = arith.constant 0 : i32
    %c0_i32_0 = arith.constant 0 : i32
    %c0_i32_1 = arith.constant 0 : i32
    return %c0_i32, %c0_i32_0 : i32, i32
  }
  func.func @transform_4(%arg0: i32) -> (i32, i32) {
    %c0_i32 = arith.constant 0 : i32
    %c0_i32_0 = arith.constant 0 : i32
    %c0_i32_1 = arith.constant 0 : i32
    return %c0_i32, %c0_i32_0 : i32, i32
  }
  func.func @transform_5(%arg0: i32) -> (i32, i32) {
    %c0_i32 = arith.constant 0 : i32
    %c0_i32_0 = arith.constant 0 : i32
    %c0_i32_1 = arith.constant 0 : i32
    return %c0_i32, %c0_i32_0 : i32, i32
  }
  func.func @transform_6(%arg0: i32) -> (i32, i32) {
    %c0_i32 = arith.constant 0 : i32
    %c0_i32_0 = arith.constant 0 : i32
    %c0_i32_1 = arith.constant 0 : i32
    return %c0_i32, %c0_i32_0 : i32, i32
  }
  func.func @transform_7(%arg0: i32) -> (i32, i32) {
    %c0_i32 = arith.constant 0 : i32
    %c0_i32_0 = arith.constant 0 : i32
    return %arg0, %c0_i32 : i32, i32
  }
}

</mosaic_0001>

<bundles_post_ra>
// kernel: _actor_forward_impl.1
= control target key start
LH: loop header
LB: loop body
LE: loop exit
PB: predicated region body
PF: predicated region fallthrough
CT: control target
= control target key end

     0   :  { %12 = vsyncpa [#allocation3], 0  ;;  %s2241_s0 = inlined_call_operand.hbm [shape: f32[16,24], index: 0, kind: input, shape index: {}]   ;;  %s2242_s1 = inlined_call_operand.hbm [shape: bf16[24,512], index: 1, kind: input, shape index: {}]   ;;  %s2243_s2 = inlined_call_operand.hbm [shape: f32[1,512], index: 2, kind: input, shape index: {}]   ;;  %s2244_s3 = inlined_call_operand.hbm [shape: bf16[512,384], index: 3, kind: input, shape index: {}]   ;;  %s2245_s4 = inlined_call_operand.vmem [shape: f32[1,384], index: 4, kind: input, shape index: {}]   ;;  %s2246_s5 = inlined_call_operand.hbm [shape: bf16[384,128], index: 5, kind: input, shape index: {}]   ;;  %s2247_s6 = inlined_call_operand.vmem [shape: f32[1,128], index: 6, kind: input, shape index: {}]   ;;  %s2248_s7 = inlined_call_operand.vmem [shape: f32[16,128], index: 7, kind: output, shape index: {}]  }
   0x1   :  { %13 = vsyncpa [#allocation5], 0  ;;  %s32_s26 = sshll.u32 %s2242_s1, 4  ;;  %s33_s26 = int_to_ptr.hbm [resolvable:$true] %s32_s26 }
   0x2   :  { %14 = vsyncpa [#allocation8], 0  ;;  %s2121_s27 = smov [#allocation4]   ;;  %s56_s8 = sshll.u32 %s2244_s3, 4  ;;  %s57_s8 = int_to_ptr.hbm [resolvable:$true] %s56_s8 }
   0x3   :  { %s34_s28 = sshll.u32 %s2121_s27, 4  ;;  %s2122_s9 = smov 256   ;;  %s35_s28 = int_to_ptr.vmem [resolvable:$true] %s34_s28 }
   0x4   :  { %s2123_s10 = smov 16   ;;  %s2124_s11 = smov [#allocation7]  }
   0x5   :  { %40 = dma.hbm_to_vmem [thread:$0]  %s33_s26, 768, %s35_s28, [#allocation5], %s2122_s9, %s2122_s9, %s2123_s10  }
   0x6   :  { %s58_s12 = sshll.u32 %s2124_s11, 4  ;;  %s2125_s13 = smov 192   ;;  %s59_s12 = int_to_ptr.vmem [resolvable:$true] %s58_s12 }
   0x7   :  { %s2126_s14 = smov 12   ;;  %s19_s16 = sshll.u32 %s2241_s0, 4  ;;  %s20_s16 = int_to_ptr.hbm [resolvable:$true] %s19_s16 }
   0x8   :  { %64 = dma.hbm_to_vmem [thread:$0]  %s57_s8, 12288, %s59_s12, [#allocation8], %s2125_s13, %s2125_s13, %s2126_s14  }
   0x9   :  { %s2127_s17 = smov [#allocation2]   ;;  %s46_s20 = sshll.u32 %s2243_s2, 4  ;;  %s47_s20 = int_to_ptr.hbm [resolvable:$true] %s46_s20 }
   0xa   :  { %s21_s18 = sshll.u32 %s2127_s17, 4  ;;  %s2128_s21 = smov 128   ;;  %s22_s18 = int_to_ptr.vmem [resolvable:$true] %s21_s18 }
   0xb   :  { %s2129_s22 = smov 8   ;;  %s2130_s23 = smov [#allocation6]  }
   0xc   :  { %27 = dma.hbm_to_vmem [thread:$0]  %s20_s16, 256, %s22_s18, [#allocation3], %s2128_s21, %s2128_s21, %s2129_s22  }
   0xd   :  { %s48_s24 = sshll.u32 %s2130_s23, 4  ;;  %s71_s27 = sshll.u32 %s2246_s5, 4  ;;  %s49_s24 = int_to_ptr.vmem [resolvable:$true] %s48_s24  ;;  %s72_s27 = int_to_ptr.hbm [resolvable:$true] %s71_s27 }
   0xe   :  { %51 = dma.hbm_to_vmem [thread:$0]  %s47_s20, 64, %s49_s24, [#allocation5]  }
   0xf   :  { %s2131_s0 = smov [#allocation9]   ;;  %s2132_s29 = smov 64  }
  0x10   :  { %s73_s28 = sshll.u32 %s2131_s0, 4  ;;  %s2133_s30 = smov 4   ;;  %s74_s28 = int_to_ptr.vmem [resolvable:$true] %s73_s28 }
  0x11   :  { %79 = dma.hbm_to_vmem [thread:$0]  %s72_s27, 3072, %s74_s28, [#allocation8], %s2132_s29, %s2132_s29, %s2133_s30  }
  0x12   :  { %2115 = dma.done.wait [#allocation3], 256  }
  0x13   :  { %2116 = vsyncadd [#allocation3], 4294967040 }
  0x14   :  { %2117 = dma.done.wait [#allocation5], 832  }
  0x15   :  { %2118 = vsyncadd [#allocation5], 4294966464 }
  0x16   :  { %2119 = dma.done.wait [#allocation8], 15360  }
  0x17   :  { %2120 = vsyncadd [#allocation8], 4294951936  ;;  %v110_v0 = vld [vmem:[#allocation4 + $0x20] sm:$0xff]  ;;  %v111_v1 = vld [vmem:[#allocation4 + $0x28] sm:$0xff]  ;;  %vm156_vm0 = vcmask 1043456   ;;  %vm152_vm1 = vcmask 195584  }
  0x18   :  { %v136_v2 = vunpack.c.l.b16 %v110_v0  ;;  %v137_v3 = vunpack.c.h.b16 %v110_v0  ;;  %v138_v4 = vunpack.c.l.b16 %v111_v1  ;;  %v139_v5 = vunpack.c.h.b16 %v111_v1  ;;  %v1349_v6 = vld [vmem:[#allocation4] sm:$0xf]  ;;  %v1851_v7 = vld [vmem:[#allocation4 + $0xc] sm:$0xf0]  ;;  %v1849_v11 = vld [vmem:[#allocation4 + $0x4] sm:$0xf] }
  0x19   :  { %v1351_v12 = vld [vmem:[#allocation4 + $0x10] sm:$0xf0]  ;;  %v1357_v13 = vld [vmem:[#allocation4 + $0x8] sm:$0xf]  ;;  %v1852_v14 = vld [vmem:[#allocation4 + $0x14] sm:$0xf0]  ;;  %v1350_v23 = vor.u32 %v1851_v7, %v1349_v6 }
  0x1a   :  { %v144_v8 = vpack.c.b16 %v136_v2, %v136_v2  ;;  %v145_v9 = vpack.c.b16 %v137_v3, %v137_v3  ;;  %v146_v10 = vpack.c.b16 %v138_v4, %v138_v4  ;;  %v103_v15 = vld [vmem:[#allocation2] sm:$0xff]  ;;  %v147_v16 = vpack.c.b16 %v139_v5, %v139_v5  ;;  %v1549_v17 = vld [vmem:[#allocation7 + $0x168] sm:$0xf]  ;;  %v1899_v22 = vld [vmem:[#allocation7 + $0x170] sm:$0xf0] }
  0x1b   :  { %v104_v21 = vld [vmem:[#allocation2 + $0x8] sm:$0xff]  ;;  %v1354_v24 = vor.u32 %v1849_v11, %v1351_v12  ;;  %v1850_v25 = vld [vmem:[#allocation4 + $0xc] sm:$0xf]  ;;  %v1875_v28 = vld [vmem:[#allocation7 + $0xb0] sm:$0xf0]  ;;  %v1358_v29 = vor.u32 %v1852_v14, %v1357_v13  ;;  %v1550_v35 = vor.u32 %v1899_v22, %v1549_v17 }
  0x1c   :  { %v158_v18 = vsel %vm156_vm0, %v144_v8, 0  ;;  %v161_v19 = vsel %vm156_vm0, %v145_v9, 0  ;;  %v164_v20 = vsel %vm156_vm0, %v146_v10, 0  ;;  %v1359_v26 = vld [vmem:[#allocation4 + $0x18] sm:$0xf0]  ;;  %v167_v34 = vsel %vm156_vm0, %v147_v16, 0 }
  0x1d   :  { %175 = vmatpush.bf16.msra.mxu3 %v158_v18  ;;  %189 = vmatpush.bf16.msra.mxu1 %v161_v19  ;;  %v1453_v27 = vld [vmem:[#allocation7 + $0xa8] sm:$0xf]  ;;  %v1537_v30 = vld [vmem:[#allocation7 + $0x150] sm:$0xf]  ;;  %v1923_v33 = vld [vmem:[#allocation7 + $0x230] sm:$0xf0]  ;;  %v2193_v39 = vpack.c.bf16 %v104_v21, %v103_v15  ;;  %v1362_v44 = vor.u32 %v1850_v25, %v1359_v26 }
  0x1e   :  { %203 = vmatpush.bf16.msra.mxu2 %v164_v20  ;;  %v1454_v31 = vor.u32 %v1875_v28, %v1453_v27  ;;  %v1645_v32 = vld [vmem:[#allocation7 + $0x228] sm:$0xf]  ;;  %v1441_v37 = vld [vmem:[#allocation7 + $0x90] sm:$0xf]  ;;  %v1872_v38 = vld [vmem:[#allocation7 + $0x98] sm:$0xf0] }
  0x1f   :  { %v1646_v36 = vor.u32 %v1923_v33, %v1645_v32  ;;  %v1896_v40 = vld [vmem:[#allocation7 + $0x158] sm:$0xf0]  ;;  %v1633_v41 = vld [vmem:[#allocation7 + $0x210] sm:$0xf]  ;;  %v1442_v43 = vor.u32 %v1872_v38, %v1441_v37  ;;  %v1429_v45 = vld [vmem:[#allocation7 + $0x78] sm:$0xf] }
  0x20   :  { %885 = vmatpush.bf16.msra.mxu0 %v1454_v31  ;;  %v1920_v42 = vld [vmem:[#allocation7 + $0x218] sm:$0xf0]  ;;  %v1869_v46 = vld [vmem:[#allocation7 + $0x80] sm:$0xf0]  ;;  %v1538_v47 = vor.u32 %v1896_v40, %v1537_v30  ;;  %v1525_v48 = vld [vmem:[#allocation7 + $0x138] sm:$0xf] }
  0x21   :  { %176 = vmatpush.bf16.msra.mxu3 %v1350_v23  ;;  %190 = vmatpush.bf16.msra.mxu1 %v1354_v24  ;;  %v1634_v49 = vor.u32 %v1920_v42, %v1633_v41  ;;  %v1893_v50 = vld [vmem:[#allocation7 + $0x140] sm:$0xf0]  ;;  %v1621_v51 = vld [vmem:[#allocation7 + $0x1f8] sm:$0xf]  ;;  %v1430_v53 = vor.u32 %v1869_v46, %v1429_v45  ;;  %v1417_v54 = vld [vmem:[#allocation7 + $0x60] sm:$0xf] }
  0x22   :  { %204 = vmatpush.bf16.msra.mxu2 %v1358_v29  ;;  %v1917_v52 = vld [vmem:[#allocation7 + $0x200] sm:$0xf0]  ;;  %v1866_v55 = vld [vmem:[#allocation7 + $0x68] sm:$0xf0]  ;;  %v1741_v56 = vld [vmem:[#allocation7 + $0x2e8] sm:$0xf]  ;;  %v1526_v57 = vor.u32 %v1893_v50, %v1525_v48 }
  0x23   :  { %v1513_v58 = vld [vmem:[#allocation7 + $0x120] sm:$0xf]  ;;  %v1622_v59 = vor.u32 %v1917_v52, %v1621_v51  ;;  %v1947_v60 = vld [vmem:[#allocation7 + $0x2f0] sm:$0xf0]  ;;  %v1890_v61 = vld [vmem:[#allocation7 + $0x128] sm:$0xf0]  ;;  %v1418_v1 = vor.u32 %v1866_v55, %v1417_v54 }
  0x24   :  { %1363 = vmatmul.msk.bf16.vlgmr.msra.gmra.mxu3 %vm152_vm1, %v2193_v39  ;;  %1364 = vmatmul.msk.bf16.vlgmr.msra.gmra.mxu1 %vm152_vm1, %v2193_v39  ;;  %v1609_v62 = vld [vmem:[#allocation7 + $0x1e0] sm:$0xf]  ;;  %v1914_v63 = vld [vmem:[#allocation7 + $0x1e8] sm:$0xf0]  ;;  %v1742_v0 = vor.u32 %v1947_v60, %v1741_v56  ;;  %v1729_v2 = vld [vmem:[#allocation7 + $0x2d0] sm:$0xf]  ;;  %v1514_v7 = vor.u32 %v1890_v61, %v1513_v58 }
  0x25   :  { %217 = vmatpush.bf16.msrb.mxu3 %v167_v34  ;;  %899 = vmatpush.bf16.msrb.mxu1 %v1550_v35  ;;  %v1944_v3 = vld [vmem:[#allocation7 + $0x2d8] sm:$0xf0]  ;;  %v1405_v4 = vld [vmem:[#allocation7 + $0x48] sm:$0xf]  ;;  %v1863_v5 = vld [vmem:[#allocation7 + $0x50] sm:$0xf0]  ;;  %v1610_v10 = vor.u32 %v1914_v63, %v1609_v62 }
  0x26   :  { %913 = vmatpush.bf16.msrb.mxu2 %v1646_v36  ;;  %886 = vmatpush.bf16.msra.mxu0 %v1442_v43  ;;  %v1730_v6 = vor.u32 %v1944_v3, %v1729_v2  ;;  %v1501_v8 = vld [vmem:[#allocation7 + $0x108] sm:$0xf]  ;;  %v1887_v9 = vld [vmem:[#allocation7 + $0x110] sm:$0xf0]  ;;  %v1717_v13 = vld [vmem:[#allocation7 + $0x2b8] sm:$0xf]  ;;  %v1406_v14 = vor.u32 %v1863_v5, %v1405_v4 }
  0x27   :  { %1365 = vmatmul.msk.bf16.vlgmr.msra.gmra.mxu2 %vm152_vm1, %v2193_v39  ;;  %v1597_v11 = vld [vmem:[#allocation7 + $0x1c8] sm:$0xf]  ;;  %v1911_v12 = vld [vmem:[#allocation7 + $0x1d0] sm:$0xf0]  ;;  %v1941_v15 = vld [vmem:[#allocation7 + $0x2c0] sm:$0xf0]  ;;  %v1502_v19 = vor.u32 %v1887_v9, %v1501_v8 }
  0x28   :  { %v1393_v16 = vld [vmem:[#allocation7 + $0x30] sm:$0xf]  ;;  %v1860_v17 = vld [vmem:[#allocation7 + $0x38] sm:$0xf0]  ;;  %v1718_v18 = vor.u32 %v1941_v15, %v1717_v13  ;;  %v1598_v21 = vor.u32 %v1911_v12, %v1597_v11  ;;  %v1705_v22 = vld [vmem:[#allocation7 + $0x2a0] sm:$0xf] }
  0x29   :  { %218 = vmatpush.bf16.msrb.mxu3 %v1362_v44  ;;  %900 = vmatpush.bf16.msrb.mxu1 %v1538_v47  ;;  %v1489_v20 = vld [vmem:[#allocation7 + $0xf0] sm:$0xf]  ;;  %v1938_v23 = vld [vmem:[#allocation7 + $0x2a8] sm:$0xf0]  ;;  %v1884_v24 = vld [vmem:[#allocation7 + $0xf8] sm:$0xf0]  ;;  %v1394_v27 = vor.u32 %v1860_v17, %v1393_v16 }
  0x2a   :  { %914 = vmatpush.bf16.msrb.mxu2 %v1634_v49  ;;  %887 = vmatpush.bf16.msra.mxu0 %v1430_v53  ;;  %v1585_v25 = vld [vmem:[#allocation7 + $0x1b0] sm:$0xf]  ;;  %v1908_v26 = vld [vmem:[#allocation7 + $0x1b8] sm:$0xf0]  ;;  %v1381_v28 = vld [vmem:[#allocation7 + $0x18] sm:$0xf]  ;;  %v1706_v30 = vor.u32 %v1938_v23, %v1705_v22  ;;  %v1490_v31 = vor.u32 %v1884_v24, %v1489_v20 }
  0x2b   :  { %v1857_v29 = vld [vmem:[#allocation7 + $0x20] sm:$0xf0]  ;;  %v1477_v32 = vld [vmem:[#allocation7 + $0xd8] sm:$0xf]  ;;  %v1586_v33 = vor.u32 %v1908_v26, %v1585_v25  ;;  %v1693_v34 = vld [vmem:[#allocation7 + $0x288] sm:$0xf] }
  0x2c   :  { %v1935_v35 = vld [vmem:[#allocation7 + $0x290] sm:$0xf0]  ;;  %v1881_v36 = vld [vmem:[#allocation7 + $0xe0] sm:$0xf0]  ;;  %v1573_v37 = vld [vmem:[#allocation7 + $0x198] sm:$0xf]  ;;  %v1382_v40 = vor.u32 %v1857_v29, %v1381_v28 }
  0x2d   :  { %927 = vmatpush.bf16.msra.mxu3 %v1742_v0  ;;  %901 = vmatpush.bf16.msrb.mxu1 %v1526_v57  ;;  %v1905_v38 = vld [vmem:[#allocation7 + $0x1a0] sm:$0xf0]  ;;  %v1465_v41 = vld [vmem:[#allocation7 + $0xc0] sm:$0xf]  ;;  %v1854_v43 = vld [vmem:[#allocation7 + $0x8] sm:$0xf0]  ;;  %v1694_v44 = vor.u32 %v1935_v35, %v1693_v34  ;;  %v1478_v45 = vor.u32 %v1881_v36, %v1477_v32 }
  0x2e   :  { %915 = vmatpush.bf16.msrb.mxu2 %v1622_v59  ;;  %888 = vmatpush.bf16.msra.mxu0 %v1418_v1  ;;  %v1369_v42 = vld [vmem:[#allocation7] sm:$0xf]  ;;  %v1878_v46 = vld [vmem:[#allocation7 + $0xc8] sm:$0xf0]  ;;  %v1574_v47 = vor.u32 %v1905_v38, %v1573_v37  ;;  %v1455_v49 = vld [vmem:[#allocation7 + $0xb4] sm:$0xf0] }
  0x2f   :  { %v1874_v48 = vld [vmem:[#allocation7 + $0xac] sm:$0xf]  ;;  %v1561_v51 = vld [vmem:[#allocation7 + $0x180] sm:$0xf]  ;;  %v1551_v52 = vld [vmem:[#allocation7 + $0x174] sm:$0xf0]  ;;  %v1370_v53 = vor.u32 %v1854_v43, %v1369_v42  ;;  %v1466_v57 = vor.u32 %v1878_v46, %v1465_v41 }
  0x30   :  { %v1898_v50 = vld [vmem:[#allocation7 + $0x16c] sm:$0xf]  ;;  %v1647_v55 = vld [vmem:[#allocation7 + $0x234] sm:$0xf0]  ;;  %v1458_v56 = vor.u32 %v1874_v48, %v1455_v49  ;;  %v1871_v59 = vld [vmem:[#allocation7 + $0x94] sm:$0xf] }
  0x31   :  { %928 = vmatpush.bf16.msra.mxu3 %v1730_v6  ;;  %902 = vmatpush.bf16.msrb.mxu1 %v1514_v7  ;;  %v1922_v54 = vld [vmem:[#allocation7 + $0x22c] sm:$0xf]  ;;  %v1443_v60 = vld [vmem:[#allocation7 + $0x9c] sm:$0xf0]  ;;  %v1554_v61 = vor.u32 %v1898_v50, %v1551_v52  ;;  %v1895_v62 = vld [vmem:[#allocation7 + $0x154] sm:$0xf] }
  0x32   :  { %916 = vmatpush.bf16.msrb.mxu2 %v1610_v10  ;;  %889 = vmatpush.bf16.msra.mxu0 %v1406_v14  ;;  %v1650_v63 = vor.u32 %v1922_v54, %v1647_v55  ;;  %v1539_v0 = vld [vmem:[#allocation7 + $0x15c] sm:$0xf0]  ;;  %v1919_v1 = vld [vmem:[#allocation7 + $0x214] sm:$0xf]  ;;  %v1446_v3 = vor.u32 %v1871_v59, %v1443_v60  ;;  %v1892_v6 = vld [vmem:[#allocation7 + $0x13c] sm:$0xf] }
  0x33   :  { %v1635_v2 = vld [vmem:[#allocation7 + $0x21c] sm:$0xf0]  ;;  %v1542_v4 = vor.u32 %v1895_v62, %v1539_v0  ;;  %v1527_v7 = vld [vmem:[#allocation7 + $0x144] sm:$0xf0]  ;;  %v1889_v9 = vld [vmem:[#allocation7 + $0x124] sm:$0xf] }
  0x34   :  { %1366 = vmatmul.msk.bf16.vlgmr.msrb.gmra.mxu3 %vm152_vm1, %v2193_v39  ;;  %v1902_v39 = vld [vmem:[#allocation7 + $0x188] sm:$0xf0]  ;;  %v1638_v5 = vor.u32 %v1919_v1, %v1635_v2  ;;  %v1530_v8 = vor.u32 %v1892_v6, %v1527_v7  ;;  %v1515_v10 = vld [vmem:[#allocation7 + $0x12c] sm:$0xf0]  ;;  %v1932_v13 = vld [vmem:[#allocation7 + $0x278] sm:$0xf0] }
  0x35   :  { %929 = vmatpush.bf16.msra.mxu3 %v1718_v18  ;;  %903 = vmatpush.bf16.msrb.mxu1 %v1502_v19  ;;  %v1562_v58 = vor.u32 %v1902_v39, %v1561_v51  ;;  %v1518_v11 = vor.u32 %v1889_v9, %v1515_v10  ;;  %v1681_v12 = vld [vmem:[#allocation7 + $0x270] sm:$0xf]  ;;  %v1868_v15 = vld [vmem:[#allocation7 + $0x7c] sm:$0xf]  ;;  %v1431_v16 = vld [vmem:[#allocation7 + $0x84] sm:$0xf0] }
  0x36   :  { %917 = vmatpush.bf16.msrb.mxu2 %v1598_v21  ;;  %890 = vmatpush.bf16.msra.mxu0 %v1394_v27  ;;  %v1682_v14 = vor.u32 %v1932_v13, %v1681_v12  ;;  %v1916_v17 = vld [vmem:[#allocation7 + $0x1fc] sm:$0xf]  ;;  %v1434_v18 = vor.u32 %v1868_v15, %v1431_v16  ;;  %v1623_v19 = vld [vmem:[#allocation7 + $0x204] sm:$0xf0]  ;;  %v1886_v21 = vld [vmem:[#allocation7 + $0x10c] sm:$0xf] }
  0x37   :  { %v1626_v20 = vor.u32 %v1916_v17, %v1623_v19  ;;  %v1503_v22 = vld [vmem:[#allocation7 + $0x114] sm:$0xf0]  ;;  %v1929_v25 = vld [vmem:[#allocation7 + $0x260] sm:$0xf0]  ;;  %v1419_v28 = vld [vmem:[#allocation7 + $0x6c] sm:$0xf0] }
  0x38   :  { %v1506_v23 = vor.u32 %v1886_v21, %v1503_v22  ;;  %v1669_v24 = vld [vmem:[#allocation7 + $0x258] sm:$0xf]  ;;  %v1865_v27 = vld [vmem:[#allocation7 + $0x64] sm:$0xf]  ;;  %v1491_v34 = vld [vmem:[#allocation7 + $0xfc] sm:$0xf0] }
  0x39   :  { %930 = vmatpush.bf16.msra.mxu3 %v1706_v30  ;;  %904 = vmatpush.bf16.msrb.mxu1 %v1490_v31  ;;  %v1670_v26 = vor.u32 %v1929_v25, %v1669_v24  ;;  %v1913_v29 = vld [vmem:[#allocation7 + $0x1e4] sm:$0xf]  ;;  %v1422_v30 = vor.u32 %v1865_v27, %v1419_v28  ;;  %v1611_v31 = vld [vmem:[#allocation7 + $0x1ec] sm:$0xf0]  ;;  %v1657_v36 = vld [vmem:[#allocation7 + $0x240] sm:$0xf] }
  0x3a   :  { %918 = vmatpush.bf16.msrb.mxu2 %v1586_v33  ;;  %891 = vmatpush.bf16.msra.mxu0 %v1382_v40  ;;  %v1614_v32 = vor.u32 %v1913_v29, %v1611_v31  ;;  %v1883_v33 = vld [vmem:[#allocation7 + $0xf4] sm:$0xf]  ;;  %v1926_v37 = vld [vmem:[#allocation7 + $0x248] sm:$0xf0]  ;;  %v1407_v41 = vld [vmem:[#allocation7 + $0x54] sm:$0xf0] }
  0x3b   :  { %v1494_v35 = vor.u32 %v1883_v33, %v1491_v34  ;;  %v1658_v38 = vor.u32 %v1926_v37, %v1657_v36  ;;  %v1862_v40 = vld [vmem:[#allocation7 + $0x4c] sm:$0xf]  ;;  %v1743_v46 = vld [vmem:[#allocation7 + $0x2f4] sm:$0xf0]  ;;  %v1880_v49 = vld [vmem:[#allocation7 + $0xdc] sm:$0xf] }
  0x3c   :  { %v1910_v42 = vld [vmem:[#allocation7 + $0x1cc] sm:$0xf]  ;;  %v1410_v43 = vor.u32 %v1862_v40, %v1407_v41  ;;  %v1479_v50 = vld [vmem:[#allocation7 + $0xe4] sm:$0xf0]  ;;  %v1859_v39 = vld [vmem:[#allocation7 + $0x34] sm:$0xf] }
  0x3d   :  { %931 = vmatpush.bf16.msra.mxu3 %v1694_v44  ;;  %905 = vmatpush.bf16.msrb.mxu1 %v1478_v45  ;;  %v1599_v44 = vld [vmem:[#allocation7 + $0x1d4] sm:$0xf0]  ;;  %v1946_v45 = vld [vmem:[#allocation7 + $0x2ec] sm:$0xf]  ;;  %v1482_v51 = vor.u32 %v1880_v49, %v1479_v50  ;;  %v1395_v52 = vld [vmem:[#allocation7 + $0x3c] sm:$0xf0] }
  0x3e   :  { %919 = vmatpush.bf16.msrb.mxu2 %v1574_v47  ;;  %892 = vmatpush.bf16.msra.mxu0 %v1370_v53  ;;  %v1602_v47 = vor.u32 %v1910_v42, %v1599_v44  ;;  %v1746_v48 = vor.u32 %v1946_v45, %v1743_v46  ;;  %v1907_v53 = vld [vmem:[#allocation7 + $0x1b4] sm:$0xf]  ;;  %v1398_v54 = vor.u32 %v1859_v39, %v1395_v52  ;;  %v1587_v55 = vld [vmem:[#allocation7 + $0x1bc] sm:$0xf0]  ;;  %v1877_v60 = vld [vmem:[#allocation7 + $0xc4] sm:$0xf] }
  0x3f   :  { %v1383_v0 = vld [vmem:[#allocation7 + $0x24] sm:$0xf0]  ;;  %v1904_v1 = vld [vmem:[#allocation7 + $0x19c] sm:$0xf]  ;;  %v1371_v9 = vld [vmem:[#allocation7 + $0xc] sm:$0xf0] }
  0x40   :  { %v1901_v10 = vld [vmem:[#allocation7 + $0x184] sm:$0xf]  ;;  %v1563_v12 = vld [vmem:[#allocation7 + $0x18c] sm:$0xf0]  ;;  %v1934_v17 = vld [vmem:[#allocation7 + $0x28c] sm:$0xf] }
  0x41   :  { %906 = vmatpush.bf16.msrb.mxu1 %v1466_v57  ;;  %932 = vmatpush.bf16.msra.mxu3 %v1682_v14  ;;  %v1731_v57 = vld [vmem:[#allocation7 + $0x2dc] sm:$0xf0]  ;;  %v1937_v13 = vld [vmem:[#allocation7 + $0x2a4] sm:$0xf]  ;;  %v1707_v14 = vld [vmem:[#allocation7 + $0x2ac] sm:$0xf0]  ;;  %v1566_v15 = vor.u32 %v1901_v10, %v1563_v12 }
  0x42   :  { %941 = vmatpush.bf16.msrb.mxu0 %v1458_v56  ;;  %920 = vmatpush.bf16.msrb.mxu2 %v1562_v58  ;;  %v1943_v56 = vld [vmem:[#allocation7 + $0x2d4] sm:$0xf]  ;;  %v1590_v58 = vor.u32 %v1907_v53, %v1587_v55  ;;  %v1710_v16 = vor.u32 %v1937_v13, %v1707_v14  ;;  %v1683_v21 = vld [vmem:[#allocation7 + $0x27c] sm:$0xf0]  ;;  %v1671_v24 = vld [vmem:[#allocation7 + $0x264] sm:$0xf0] }
  0x43   :  { %v1734_v59 = vor.u32 %v1943_v56, %v1731_v57  ;;  %v2203_v25 = vld [vmem:[#allocation6] sm:$0xf]  ;;  %v1925_v29 = vld [vmem:[#allocation7 + $0x244] sm:$0xf]  ;;  %v1557_v41 = vld [vmem:[#allocation7 + $0x170] sm:$0xf] }
  0x44   :  { %v115_v28 = vperm.slane %v2203_v25, 1  ;;  %v1900_v42 = vld [vmem:[#allocation7 + $0x178] sm:$0xf0]  ;;  %v1897_v49 = vld [vmem:[#allocation7 + $0x160] sm:$0xf0] }
  0x45   :  { %955 = vmatpush.bf16.msra.mxu1 %v1554_v61  ;;  %933 = vmatpush.bf16.msra.mxu3 %v1670_v26  ;;  %v1467_v61 = vld [vmem:[#allocation7 + $0xcc] sm:$0xf0]  ;;  %v1558_v45 = vor.u32 %v1900_v42, %v1557_v41  ;;  %v1876_v53 = vld [vmem:[#allocation7 + $0xb8] sm:$0xf0]  ;;  %v1891_v10 = vld [vmem:[#allocation7 + $0x130] sm:$0xf0] }
  0x46   :  { %969 = vmatpush.bf16.msra.mxu2 %v1650_v63  ;;  %942 = vmatpush.bf16.msrb.mxu0 %v1446_v3  ;;  %v1470_v62 = vor.u32 %v1877_v60, %v1467_v61  ;;  %v1856_v63 = vld [vmem:[#allocation7 + $0x1c] sm:$0xf]  ;;  %v1575_v3 = vld [vmem:[#allocation7 + $0x1a4] sm:$0xf0]  ;;  %v1461_v52 = vld [vmem:[#allocation7 + $0xb0] sm:$0xf] }
  0x47   :  { %v1386_v2 = vor.u32 %v1856_v63, %v1383_v0  ;;  %v1578_v6 = vor.u32 %v1904_v1, %v1575_v3  ;;  %v1653_v57 = vld [vmem:[#allocation7 + $0x230] sm:$0xf]  ;;  %v1533_v61 = vld [vmem:[#allocation7 + $0x140] sm:$0xf]  ;;  %v1462_v0 = vor.u32 %v1876_v53, %v1461_v52  ;;  %v1449_v3 = vld [vmem:[#allocation7 + $0x98] sm:$0xf] }
  0x48   :  { %v1437_v14 = vld [vmem:[#allocation7 + $0x80] sm:$0xf]  ;;  %v1912_v41 = vld [vmem:[#allocation7 + $0x1d8] sm:$0xf0]  ;;  %v1749_v42 = vld [vmem:[#allocation7 + $0x2f0] sm:$0xf] }
  0x49   :  { %956 = vmatpush.bf16.msra.mxu1 %v1542_v4  ;;  %934 = vmatpush.bf16.msra.mxu3 %v1658_v38  ;;  %v1940_v4 = vld [vmem:[#allocation7 + $0x2bc] sm:$0xf]  ;;  %v114_v38 = vperm.slane %v2203_v25, 0  ;;  %v1401_v52 = vld [vmem:[#allocation7 + $0x38] sm:$0xf] }
  0x4a   :  { %970 = vmatpush.bf16.msra.mxu2 %v1638_v5  ;;  %943 = vmatpush.bf16.msrb.mxu0 %v1434_v18  ;;  %v1719_v5 = vld [vmem:[#allocation7 + $0x2c4] sm:$0xf0]  ;;  %v1695_v18 = vld [vmem:[#allocation7 + $0x294] sm:$0xf0]  ;;  %v1861_v53 = vld [vmem:[#allocation7 + $0x40] sm:$0xf0] }
  0x4b   :  { %v1722_v7 = vor.u32 %v1940_v4, %v1719_v5  ;;  %v1698_v19 = vor.u32 %v1934_v17, %v1695_v18  ;;  %v1873_v4 = vld [vmem:[#allocation7 + $0xa0] sm:$0xf0]  ;;  %v1629_v17 = vld [vmem:[#allocation7 + $0x200] sm:$0xf]  ;;  %v1918_v18 = vld [vmem:[#allocation7 + $0x208] sm:$0xf0] }
  0x4c   :  { %v1450_v12 = vor.u32 %v1873_v4, %v1449_v3  ;;  %v1581_v3 = vld [vmem:[#allocation7 + $0x1a0] sm:$0xf] }
  0x4d   :  { %957 = vmatpush.bf16.msra.mxu1 %v1530_v8  ;;  %983 = vmatpush.bf16.msrb.mxu3 %v1746_v48  ;;  %v1853_v8 = vld [vmem:[#allocation7 + $0x4] sm:$0xf]  ;;  %v1545_v48 = vld [vmem:[#allocation7 + $0x158] sm:$0xf] }
  0x4e   :  { %971 = vmatpush.bf16.msra.mxu2 %v1626_v20  ;;  %944 = vmatpush.bf16.msrb.mxu0 %v1422_v30  ;;  %v1931_v20 = vld [vmem:[#allocation7 + $0x274] sm:$0xf]  ;;  %v1659_v30 = vld [vmem:[#allocation7 + $0x24c] sm:$0xf0]  ;;  %v1546_v56 = vor.u32 %v1897_v49, %v1545_v48  ;;  %v1882_v48 = vld [vmem:[#allocation7 + $0xe8] sm:$0xf0] }
  0x4f   :  { %v1686_v22 = vor.u32 %v1931_v20, %v1683_v21  ;;  %v1662_v31 = vor.u32 %v1925_v29, %v1659_v30  ;;  %v1509_v20 = vld [vmem:[#allocation7 + $0x110] sm:$0xf]  ;;  %v1888_v21 = vld [vmem:[#allocation7 + $0x118] sm:$0xf0]  ;;  %v1915_v29 = vld [vmem:[#allocation7 + $0x1f0] sm:$0xf0] }
  0x51   :  { %958 = vmatpush.bf16.msra.mxu1 %v1518_v11  ;;  %984 = vmatpush.bf16.msrb.mxu3 %v1734_v59  ;;  %v1374_v11 = vor.u32 %v1853_v8, %v1371_v9  ;;  %v1921_v8 = vld [vmem:[#allocation7 + $0x220] sm:$0xf0]  ;;  %v1521_v9 = vld [vmem:[#allocation7 + $0x128] sm:$0xf] }
  0x52   :  { %972 = vmatpush.bf16.msra.mxu2 %v1614_v32  ;;  %945 = vmatpush.bf16.msrb.mxu0 %v1410_v43 }
  0x55   :  { %959 = vmatpush.bf16.msra.mxu1 %v1506_v23  ;;  %985 = vmatpush.bf16.msrb.mxu3 %v1722_v7  ;;  %v1928_v23 = vld [vmem:[#allocation7 + $0x25c] sm:$0xf]  ;;  %v1641_v7 = vld [vmem:[#allocation7 + $0x218] sm:$0xf] }
  0x56   :  { %973 = vmatpush.bf16.msra.mxu2 %v1602_v47  ;;  %946 = vmatpush.bf16.msrb.mxu0 %v1398_v54  ;;  %v1674_v27 = vor.u32 %v1928_v23, %v1671_v24  ;;  %v1642_v13 = vor.u32 %v1921_v8, %v1641_v7  ;;  %v1630_v23 = vor.u32 %v1918_v18, %v1629_v17  ;;  %v1425_v24 = vld [vmem:[#allocation7 + $0x68] sm:$0xf]  ;;  %v1725_v7 = vld [vmem:[#allocation7 + $0x2c0] sm:$0xf]  ;;  %v1942_v8 = vld [vmem:[#allocation7 + $0x2c8] sm:$0xf0] }
  0x57   :  { %v1939_v17 = vld [vmem:[#allocation7 + $0x2b0] sm:$0xf0] }
  0x59   :  { %960 = vmatpush.bf16.msra.mxu1 %v1494_v35  ;;  %986 = vmatpush.bf16.msrb.mxu3 %v1710_v16  ;;  %v116_v35 = vperm.slane %v2203_v25, 2  ;;  %v1522_v16 = vor.u32 %v1891_v10, %v1521_v9 }
  0x5a   :  { %974 = vmatpush.bf16.msra.mxu2 %v1590_v58  ;;  %947 = vmatpush.bf16.msrb.mxu0 %v1386_v2  ;;  %v1924_v58 = vld [vmem:[#allocation7 + $0x238] sm:$0xf0] }
  0x5b   :  { %v1654_v2 = vor.u32 %v1924_v58, %v1653_v57  ;;  %v1737_v57 = vld [vmem:[#allocation7 + $0x2d8] sm:$0xf]  ;;  %v1945_v58 = vld [vmem:[#allocation7 + $0x2e0] sm:$0xf0] }
  0x5d   :  { %961 = vmatpush.bf16.msra.mxu1 %v1482_v51  ;;  %987 = vmatpush.bf16.msrb.mxu3 %v1698_v19  ;;  %v117_v19 = vperm.slane %v2203_v25, 3 }
  0x5e   :  { %975 = vmatpush.bf16.msra.mxu2 %v1578_v6  ;;  %948 = vmatpush.bf16.msrb.mxu0 %v1374_v11 }
  0x61   :  { %962 = vmatpush.bf16.msra.mxu1 %v1470_v62  ;;  %988 = vmatpush.bf16.msrb.mxu3 %v1686_v22  ;;  %v1894_v62 = vld [vmem:[#allocation7 + $0x148] sm:$0xf0] }
  0x62   :  { %976 = vmatpush.bf16.msra.mxu2 %v1566_v15  ;;  %v1534_v6 = vor.u32 %v1894_v62, %v1533_v61  ;;  %v1870_v15 = vld [vmem:[#allocation7 + $0x88] sm:$0xf0]  ;;  %v1402_v61 = vor.u32 %v1861_v53, %v1401_v52  ;;  %v365_v53 = vld [vmem:[%s2245_s4] sm:$0x7] }
  0x63   :  { %v1438_v22 = vor.u32 %v1870_v15, %v1437_v14  ;;  %v1569_v14 = vld [vmem:[#allocation7 + $0x188] sm:$0xf]  ;;  %v1903_v15 = vld [vmem:[#allocation7 + $0x190] sm:$0xf0] }
  0x64   :  { %v1970_v52 = vld [vmem:[#allocation9 + $0xa8] sm:$0xff] }
  0x65   :  { %989 = vmatpush.bf16.msrb.mxu3 %v1674_v27  ;;  %v1510_v27 = vor.u32 %v1888_v21, %v1509_v20  ;;  %v1701_v21 = vld [vmem:[#allocation7 + $0x290] sm:$0xf] }
  0x69   :  { %990 = vmatpush.bf16.msrb.mxu3 %v1662_v31  ;;  %v1497_v31 = vld [vmem:[#allocation7 + $0xf8] sm:$0xf] }
  0xa1   :  { %v192_v26 = vpop.f32.mrf.mxu1 }
  0xa2   :  { %v193_v32 = vadd.f32 %v192_v26, %v115_v28  ;;  %v1867_v26 = vld [vmem:[#allocation7 + $0x70] sm:$0xf0] }
  0xa4   :  { %v226_v37 = vmax.f32 %v193_v32, 0.0  ;;  %v1885_v32 = vld [vmem:[#allocation7 + $0x100] sm:$0xf0] }
  0xa7   :  { %v178_v33 = vpop.f32.mrf.mxu3 }
  0xa8   :  { %v179_v46 = vadd.f32 %v178_v33, %v114_v38 }
  0xa9   :  { %v194_v36 = vpop.f32.mrf.mxu1 }
  0xaa   :  { %v206_v34 = vpop.f32.mrf.mxu2  ;;  %v195_v40 = vadd.f32 %v194_v36, %v115_v28  ;;  %v225_v59 = vmax.f32 %v179_v46, 0.0  ;;  %v1617_v28 = vld [vmem:[#allocation7 + $0x1e8] sm:$0xf]  ;;  %v1413_v36 = vld [vmem:[#allocation7 + $0x50] sm:$0xf] }
  0xab   :  { %v207_v44 = vadd.f32 %v206_v34, %v116_v35  ;;  %v1426_v34 = vor.u32 %v1867_v26, %v1425_v24  ;;  %v1618_v25 = vor.u32 %v1915_v29, %v1617_v28  ;;  %v1485_v46 = vld [vmem:[#allocation7 + $0xe0] sm:$0xf]  ;;  %v1689_v24 = vld [vmem:[#allocation7 + $0x278] sm:$0xf]  ;;  %v1933_v26 = vld [vmem:[#allocation7 + $0x280] sm:$0xf0] }
  0xac   :  { %v230_v43 = vmax.f32 %v195_v40, 0.0  ;;  %v1498_v40 = vor.u32 %v1885_v32, %v1497_v31  ;;  %v1677_v28 = vld [vmem:[#allocation7 + $0x260] sm:$0xf]  ;;  %v1930_v29 = vld [vmem:[#allocation7 + $0x268] sm:$0xf0] }
  0xad   :  { %v227_v54 = vmax.f32 %v207_v44, 0.0  ;;  %v1927_v31 = vld [vmem:[#allocation7 + $0x250] sm:$0xf0] }
  0xae   :  { %v2208_v47 = vpack.c.bf16 %v230_v43, %v226_v37  ;;  %v1864_v37 = vld [vmem:[#allocation7 + $0x58] sm:$0xf0] }
  0xaf   :  { %v180_v50 = vpop.f32.mrf.mxu3  ;;  %v1948_v43 = vld [vmem:[#allocation7 + $0x2f8] sm:$0xf0]  ;;  %v1414_v49 = vor.u32 %v1864_v37, %v1413_v36  ;;  %v1951_v36 = vld [vmem:[#allocation9 + $0x10] sm:$0xff] }
  0xb0   :  { %v181_v51 = vadd.f32 %v180_v50, %v114_v38  ;;  %907 = vmatmul.bf16.vlgmr.msrb.gmra.mxu1 %v2208_v47  ;;  %v1605_v38 = vld [vmem:[#allocation7 + $0x1d0] sm:$0xf] }
  0xb1   :  { %1011 = vmatpush.bf16.msrb.mxu1 %v1558_v45  ;;  %v1963_v37 = vld [vmem:[#allocation9 + $0x70] sm:$0xff] }
  0xb2   :  { %v208_v39 = vpop.f32.mrf.mxu2  ;;  %v229_v60 = vmax.f32 %v181_v51, 0.0  ;;  %v1606_v51 = vor.u32 %v1912_v41, %v1605_v38  ;;  %v1950_v38 = vld [vmem:[#allocation9 + $0x8] sm:$0xff]  ;;  %v1949_v41 = vld [vmem:[#allocation9] sm:$0xff] }
  0xb3   :  { %v209_v55 = vadd.f32 %v208_v39, %v116_v35  ;;  %v1750_v39 = vor.u32 %v1948_v43, %v1749_v42  ;;  %v1961_v42 = vld [vmem:[#allocation9 + $0x60] sm:$0xff] }
  0xb4   :  { %v2211_v1 = vpack.c.bf16 %v229_v60, %v225_v59  ;;  %v1473_v59 = vld [vmem:[#allocation7 + $0xc8] sm:$0xf]  ;;  %v1879_v60 = vld [vmem:[#allocation7 + $0xd0] sm:$0xf0] }
  0xb5   :  { %v231_v63 = vmax.f32 %v209_v55, 0.0  ;;  %1012 = vmatpush.bf16.msrb.mxu1 %v1546_v56  ;;  %v1486_v55 = vor.u32 %v1882_v48, %v1485_v46  ;;  %v1909_v56 = vld [vmem:[#allocation7 + $0x1c0] sm:$0xf0]  ;;  %v1474_v4 = vor.u32 %v1879_v60, %v1473_v59  ;;  %v1968_v60 = vld [vmem:[#allocation9 + $0x98] sm:$0xff] }
  0xb6   :  { %893 = vmatmul.bf16.vlgmr.msra.gmra.mxu0 %v2211_v1 }
  0xb7   :  { %v2213_v5 = vpack.c.bf16 %v231_v63, %v227_v54  ;;  %v220_v11 = vpop.f32.mrf.mxu3  ;;  %997 = vmatpush.bf16.msra.mxu0 %v1462_v0  ;;  %v1593_v54 = vld [vmem:[#allocation7 + $0x1b8] sm:$0xf]  ;;  %v1738_v63 = vor.u32 %v1945_v58, %v1737_v57  ;;  %v1389_v0 = vld [vmem:[#allocation7 + $0x20] sm:$0xf] }
  0xb8   :  { %v221_v30 = vadd.f32 %v220_v11, %v117_v19  ;;  %v1594_v62 = vor.u32 %v1909_v56, %v1593_v54  ;;  %v1726_v11 = vor.u32 %v1942_v8, %v1725_v7  ;;  %v367_v54 = vperm.slane %v365_v53, 0  ;;  %v1969_v56 = vld [vmem:[#allocation9 + $0xa0] sm:$0xff] }
  0xb9   :  { %921 = vmatmul.bf16.vlgmr.msrb.gmra.mxu2 %v2213_v5  ;;  %1013 = vmatpush.bf16.msrb.mxu1 %v1534_v6  ;;  %v1906_v6 = vld [vmem:[#allocation7 + $0x1a8] sm:$0xf0] }
  0xba   :  { %1025 = vmatpush.bf16.msrb.mxu2 %v1654_v2  ;;  %v228_v44 = vmax.f32 %v221_v30, 0.0  ;;  %v1858_v2 = vld [vmem:[#allocation7 + $0x28] sm:$0xf0]  ;;  %v1582_v10 = vor.u32 %v1906_v6, %v1581_v3  ;;  %v1665_v30 = vld [vmem:[#allocation7 + $0x248] sm:$0xf] }
  0xbb   :  { %998 = vmatpush.bf16.msra.mxu0 %v1450_v12  ;;  %v1390_v9 = vor.u32 %v1858_v2, %v1389_v0  ;;  %v1377_v12 = vld [vmem:[#allocation7 + $0x8] sm:$0xf]  ;;  %v1666_v32 = vor.u32 %v1927_v31, %v1665_v30  ;;  %v1967_v2 = vld [vmem:[#allocation9 + $0x90] sm:$0xff] }
  0xbd   :  { %1014 = vmatpush.bf16.msrb.mxu1 %v1522_v16  ;;  %v1713_v16 = vld [vmem:[#allocation7 + $0x2a8] sm:$0xf] }
  0xbe   :  { %1026 = vmatpush.bf16.msrb.mxu2 %v1642_v13  ;;  %v1855_v13 = vld [vmem:[#allocation7 + $0x10] sm:$0xf0]  ;;  %v1714_v20 = vor.u32 %v1939_v17, %v1713_v16  ;;  %v1965_v17 = vld [vmem:[#allocation9 + $0x80] sm:$0xff] }
  0xbf   :  { %v222_v33 = vpop.f32.mrf.mxu3  ;;  %999 = vmatpush.bf16.msra.mxu0 %v1438_v22  ;;  %v1378_v18 = vor.u32 %v1855_v13, %v1377_v12  ;;  %v1936_v22 = vld [vmem:[#allocation7 + $0x298] sm:$0xf0]  ;;  %v368_v13 = vperm.slane %v365_v53, 1 }
  0xc0   :  { %v223_v35 = vadd.f32 %v222_v33, %v117_v19  ;;  %963 = vmatmul.bf16.vlgmr.msra.gmra.mxu1 %v2208_v47  ;;  %v1570_v19 = vor.u32 %v1903_v15, %v1569_v14  ;;  %v1956_v33 = vld [vmem:[#allocation9 + $0x38] sm:$0xff] }
  0xc1   :  { %1015 = vmatpush.bf16.msrb.mxu1 %v1510_v27  ;;  %v1690_v27 = vor.u32 %v1933_v26, %v1689_v24 }
  0xc2   :  { %1027 = vmatpush.bf16.msrb.mxu2 %v1630_v23  ;;  %v232_v45 = vmax.f32 %v223_v35, 0.0  ;;  %v1702_v23 = vor.u32 %v1936_v22, %v1701_v21  ;;  %v1952_v35 = vld [vmem:[#allocation9 + $0x18] sm:$0xff] }
  0xc3   :  { %1000 = vmatpush.bf16.msra.mxu0 %v1426_v34  ;;  %v1955_v34 = vld [vmem:[#allocation9 + $0x30] sm:$0xff] }
  0xc4   :  { %v2219_v50 = vpack.c.bf16 %v232_v45, %v228_v44  ;;  %v1960_v44 = vld [vmem:[#allocation9 + $0x58] sm:$0xff] }
  0xc5   :  { %1016 = vmatpush.bf16.msrb.mxu1 %v1498_v40  ;;  %v1962_v40 = vld [vmem:[#allocation9 + $0x68] sm:$0xff]  ;;  %v1972_v45 = vld [vmem:[#allocation9 + $0xb8] sm:$0xff] }
  0xc6   :  { %1028 = vmatpush.bf16.msrb.mxu2 %v1618_v25  ;;  %935 = vmatmul.bf16.vlgmr.msra.gmra.mxu3 %v2219_v50  ;;  %v1964_v25 = vld [vmem:[#allocation9 + $0x78] sm:$0xff] }
  0xc7   :  { %949 = vmatmul.bf16.vlgmr.msrb.gmra.mxu0 %v2211_v1  ;;  %1039 = vmatpush.bf16.msra.mxu3 %v1750_v39  ;;  %v1958_v39 = vld [vmem:[#allocation9 + $0x48] sm:$0xff] }
  0xc8   :  { %1001 = vmatpush.bf16.msra.mxu0 %v1414_v49  ;;  %v1959_v49 = vld [vmem:[#allocation9 + $0x50] sm:$0xff] }
  0xc9   :  { %977 = vmatmul.bf16.vlgmr.msra.gmra.mxu2 %v2213_v5  ;;  %1017 = vmatpush.bf16.msrb.mxu1 %v1486_v55  ;;  %v1957_v55 = vld [vmem:[#allocation9 + $0x40] sm:$0xff] }
  0xca   :  { %1029 = vmatpush.bf16.msrb.mxu2 %v1606_v51 }
  0xcb   :  { %1040 = vmatpush.bf16.msra.mxu3 %v1738_v63 }
  0xcc   :  { %1002 = vmatpush.bf16.msra.mxu0 %v1402_v61 }
  0xcd   :  { %1018 = vmatpush.bf16.msrb.mxu1 %v1474_v4 }
  0xce   :  { %1030 = vmatpush.bf16.msrb.mxu2 %v1594_v62 }
  0xcf   :  { %1041 = vmatpush.bf16.msra.mxu3 %v1726_v11 }
  0xd0   :  { %1003 = vmatpush.bf16.msra.mxu0 %v1390_v9  ;;  %1019 = vmatmul.bf16.vlgmr.msrb.gmra.mxu1 %v2208_v47  ;;  %v1678_v47 = vor.u32 %v1930_v29, %v1677_v28 }
  0xd1   :  { %1272 = vmatpush.bf16.msra.mxu1 %v1964_v25 }
  0xd2   :  { %1031 = vmatpush.bf16.msrb.mxu2 %v1582_v10  ;;  %v1966_v10 = vld [vmem:[#allocation9 + $0x88] sm:$0xff] }
  0xd3   :  { %1042 = vmatpush.bf16.msra.mxu3 %v1714_v20 }
  0xd4   :  { %1004 = vmatpush.bf16.msra.mxu0 %v1378_v18 }
  0xd5   :  { %1273 = vmatpush.bf16.msra.mxu1 %v1963_v37 }
  0xd6   :  { %1032 = vmatpush.bf16.msrb.mxu2 %v1570_v19  ;;  %991 = vmatmul.bf16.vlgmr.msrb.gmra.mxu3 %v2219_v50 }
  0xd7   :  { %1005 = vmatmul.bf16.vlgmr.msra.gmra.mxu0 %v2211_v1  ;;  %1043 = vmatpush.bf16.msra.mxu3 %v1702_v23  ;;  %v1954_v1 = vld [vmem:[#allocation9 + $0x28] sm:$0xff] }
  0xd8   :  { %1258 = vmatpush.bf16.msrb.mxu0 %v1956_v33 }
  0xd9   :  { %1033 = vmatmul.bf16.vlgmr.msrb.gmra.mxu2 %v2213_v5  ;;  %v1953_v5 = vld [vmem:[#allocation9 + $0x20] sm:$0xff]  ;;  %1274 = vmatpush.bf16.msra.mxu1 %v1962_v40 }
  0xda   :  { %1286 = vmatpush.bf16.msra.mxu2 %v1972_v45 }
  0xdb   :  { %1044 = vmatpush.bf16.msra.mxu3 %v1690_v27 }
  0xdc   :  { %1259 = vmatpush.bf16.msrb.mxu0 %v1955_v34 }
  0xdd   :  { %1275 = vmatpush.bf16.msra.mxu1 %v1961_v42 }
  0xdf   :  { %1045 = vmatpush.bf16.msra.mxu3 %v1678_v47 }
  0xe0   :  { %1260 = vmatpush.bf16.msrb.mxu0 %v1954_v1 }
  0xe1   :  { %1276 = vmatpush.bf16.msra.mxu1 %v1960_v44 }
  0xe3   :  { %1046 = vmatpush.bf16.msra.mxu3 %v1666_v32 }
  0xe4   :  { %1261 = vmatpush.bf16.msrb.mxu0 %v1953_v5  ;;  %v369_v5 = vperm.slane %v365_v53, 2  ;;  %v1986_v53 = vld [vmem:[%s2247_s6] ss:$0 sm:$0xff] }
  0xe5   :  { %1277 = vmatpush.bf16.msra.mxu1 %v1959_v49 }
  0xe6   :  { %1047 = vmatmul.bf16.vlgmr.msra.gmra.mxu3 %v2219_v50  ;;  %v1971_v50 = vld [vmem:[#allocation9 + $0xb0] sm:$0xff] }
  0xe7   :  { %1287 = vmatpush.bf16.msra.mxu2 %v1971_v50 }
  0xe8   :  { %1262 = vmatpush.bf16.msrb.mxu0 %v1952_v35 }
  0xe9   :  { %1278 = vmatpush.bf16.msra.mxu1 %v1958_v39 }
  0xeb   :  { %1288 = vmatpush.bf16.msra.mxu2 %v1970_v52 }
  0xec   :  { %1263 = vmatpush.bf16.msrb.mxu0 %v1951_v36 }
  0xed   :  { %1279 = vmatpush.bf16.msra.mxu1 %v1957_v55 }
  0xef   :  { %1289 = vmatpush.bf16.msra.mxu2 %v1969_v56 }
  0xf0   :  { %1264 = vmatpush.bf16.msrb.mxu0 %v1950_v38 }
  0xf3   :  { %1290 = vmatpush.bf16.msra.mxu2 %v1968_v60 }
  0xf4   :  { %1265 = vmatpush.bf16.msrb.mxu0 %v1949_v41 }
  0xf7   :  { %1291 = vmatpush.bf16.msra.mxu2 %v1967_v2 }
  0xfb   :  { %1292 = vmatpush.bf16.msra.mxu2 %v1966_v10 }
  0xff   :  { %1293 = vmatpush.bf16.msra.mxu2 %v1965_v17 }
 0x12d   :  { %v908_v46 = vpop.f32.mrf.mxu1 }
 0x133   :  { %v894_v43 = vpop.f32.mrf.mxu0 }
 0x134   :  { %v895_v59 = vadd.f32 %v894_v43, %v367_v54 }
 0x135   :  { %v910_v57 = vpop.f32.mrf.mxu1 }
 0x136   :  { %v909_v0 = vadd.f32 %v908_v46, %v895_v59 }
 0x13b   :  { %v896_v51 = vpop.f32.mrf.mxu0 }
 0x13c   :  { %v922_v48 = vpop.f32.mrf.mxu2  ;;  %v897_v62 = vadd.f32 %v896_v51, %v367_v54 }
 0x13d   :  { %v923_v3 = vadd.f32 %v922_v48, %v909_v0  ;;  %v964_v6 = vpop.f32.mrf.mxu1 }
 0x13e   :  { %v911_v4 = vadd.f32 %v910_v57, %v897_v62 }
 0x144   :  { %v924_v58 = vpop.f32.mrf.mxu2  ;;  %v950_v63 = vpop.f32.mrf.mxu0 }
 0x145   :  { %v925_v7 = vadd.f32 %v924_v58, %v911_v4  ;;  %v951_v19 = vadd.f32 %v950_v63, %v368_v13  ;;  %v966_v21 = vpop.f32.mrf.mxu1 }
 0x147   :  { %v965_v24 = vadd.f32 %v964_v6, %v951_v19 }
 0x149   :  { %v936_v61 = vpop.f32.mrf.mxu3 }
 0x14a   :  { %v937_v8 = vadd.f32 %v936_v61, %v923_v3 }
 0x14c   :  { %v978_v9 = vpop.f32.mrf.mxu2  ;;  %v1053_v14 = vmax.f32 %v937_v8, 0.0  ;;  %v952_v15 = vpop.f32.mrf.mxu0 }
 0x14d   :  { %v953_v22 = vadd.f32 %v952_v15, %v368_v13  ;;  %v979_v26 = vadd.f32 %v978_v9, %v965_v24  ;;  %v1020_v32 = vpop.f32.mrf.mxu1 }
 0x14f   :  { %v967_v27 = vadd.f32 %v966_v21, %v953_v22 }
 0x151   :  { %v938_v11 = vpop.f32.mrf.mxu3 }
 0x152   :  { %v939_v12 = vadd.f32 %v938_v11, %v925_v7 }
 0x154   :  { %v1056_v16 = vmax.f32 %v939_v12, 0.0  ;;  %v980_v23 = vpop.f32.mrf.mxu2  ;;  %v1006_v28 = vpop.f32.mrf.mxu0 }
 0x155   :  { %v981_v29 = vadd.f32 %v980_v23, %v967_v27  ;;  %v1007_v36 = vadd.f32 %v1006_v28, %v369_v5  ;;  %v1022_v41 = vpop.f32.mrf.mxu1 }
 0x156   :  { %v1059_v18 = vpack.c.bf16 %v1056_v16, %v1053_v14 }
 0x157   :  { %v1021_v40 = vadd.f32 %v1020_v32, %v1007_v36 }
 0x158   :  { %1266 = vmatmul.bf16.vlgmr.msrb.gmra.mxu0 %v1059_v18 }
 0x159   :  { %v992_v20 = vpop.f32.mrf.mxu3 }
 0x15a   :  { %v993_v47 = vadd.f32 %v992_v20, %v979_v26 }
 0x15c   :  { %v1054_v33 = vmax.f32 %v993_v47, 0.0  ;;  %v1034_v34 = vpop.f32.mrf.mxu2  ;;  %v1008_v25 = vpop.f32.mrf.mxu0 }
 0x15d   :  { %v1009_v38 = vadd.f32 %v1008_v25, %v369_v5  ;;  %v1035_v43 = vadd.f32 %v1034_v34, %v1021_v40 }
 0x15f   :  { %v1023_v44 = vadd.f32 %v1022_v41, %v1009_v38 }
 0x161   :  { %v994_v30 = vpop.f32.mrf.mxu3 }
 0x162   :  { %v995_v31 = vadd.f32 %v994_v30, %v981_v29 }
 0x164   :  { %v1057_v1 = vmax.f32 %v995_v31, 0.0  ;;  %v1036_v42 = vpop.f32.mrf.mxu2 }
 0x165   :  { %v1037_v45 = vadd.f32 %v1036_v42, %v1023_v44 }
 0x166   :  { %v1060_v35 = vpack.c.bf16 %v1057_v1, %v1054_v33 }
 0x168   :  { %1280 = vmatmul.bf16.vlgmr.msra.gmra.mxu1 %v1060_v35 }
 0x169   :  { %v1048_v37 = vpop.f32.mrf.mxu3 }
 0x16a   :  { %v1049_v46 = vadd.f32 %v1048_v37, %v1035_v43 }
 0x16c   :  { %v1055_v50 = vmax.f32 %v1049_v46, 0.0 }
 0x171   :  { %v1050_v48 = vpop.f32.mrf.mxu3 }
 0x172   :  { %v1051_v49 = vadd.f32 %v1050_v48, %v1037_v45 }
 0x174   :  { %v1058_v51 = vmax.f32 %v1051_v49, 0.0 }
 0x176   :  { %v1061_v39 = vpack.c.bf16 %v1058_v51, %v1055_v50 }
 0x178   :  { %1294 = vmatmul.bf16.vlgmr.msra.gmra.mxu2 %v1061_v39 }
 0x1d5   :  { %v1267_v52 = vpop.f32.mrf.mxu0 }
 0x1d6   :  { %v1268_v55 = vadd.f32 %v1986_v53, %v1267_v52 }
 0x1dd   :  { %v1269_v59 = vpop.f32.mrf.mxu0 }
 0x1de   :  { %v1270_v62 = vadd.f32 %v1986_v53, %v1269_v59 }
 0x1e5   :  { %v1281_v54 = vpop.f32.mrf.mxu1 }
 0x1e6   :  { %v1282_v56 = vadd.f32 %v1281_v54, %v1268_v55 }
 0x1ed   :  { %v1283_v61 = vpop.f32.mrf.mxu1 }
 0x1ee   :  { %v1284_v63 = vadd.f32 %v1283_v61, %v1270_v62 }
 0x1fb   :  { %v1295_v57 = vpop.f32.mrf.mxu2 }
 0x1fc   :  { %v1296_v58 = vadd.f32 %v1295_v57, %v1282_v56 }
 0x1fe   :  { %v1847_v60 = vmul.f32 -1.442695, %v1296_v58 }
 0x200   :  { %1987 = vpow2.f32 %v1847_v60 }
 0x203   :  { %v1297_v0 = vpop.f32.mrf.mxu2 }
 0x204   :  { %v1298_v2 = vadd.f32 %v1297_v0, %v1284_v63 }
 0x206   :  { %v1988_v3 = vpop.eup %1987  ;;  %v1848_v4 = vmul.f32 -1.442695, %v1298_v2 }
 0x207   :  { %v1306_v6 = vadd.f32 1.0, %v1988_v3 }
 0x208   :  { %1989 = vpow2.f32 %v1848_v4 }
 0x209   :  { %1991 = vrcp.f32 %v1306_v6  ;;  %v1319_v12 = vand.u32 2147483648, %v1306_v6  ;;  %v1317_v14 = vand.u32 2147483647, %v1306_v6  ;;  %vm1313_vm3 = vweird.f32 %v1306_v6 }
 0x20b   :  { %v1320_v17 = vor.u32 1.1754944e-38, %v1319_v12  ;;  %vm1318_vm5 = vcmp.eq.f32.partialorder %v1317_v14, 8.507059e+37 }
 0x20e   :  { %v1990_v7 = vpop.eup %1989 }
 0x20f   :  { %v1992_v8 = vpop.eup %1991  ;;  %v1307_v9 = vadd.f32 1.0, %v1990_v7 }
 0x210   :  { %v1309_v10 = vmul.f32 %v1992_v8, %v1306_v6  ;;  %vm1314_vm2 = vweird.f32 %v1992_v8 }
 0x211   :  { %1993 = vrcp.f32 %v1307_v9  ;;  %vm1315_vm4 = vmor %vm1313_vm3, %vm1314_vm2  ;;  %v1334_v22 = vand.u32 2147483648, %v1307_v9  ;;  %v1332_v24 = vand.u32 2147483647, %v1307_v9  ;;  %vm1328_vm7 = vweird.f32 %v1307_v9 }
 0x212   :  { %v1310_v11 = vsub.f32 1.0, %v1309_v10 }
 0x213   :  { %v1335_v27 = vor.u32 1.1754944e-38, %v1334_v22  ;;  %vm1333_vm9 = vcmp.eq.f32.partialorder %v1332_v24, 8.507059e+37 }
 0x214   :  { %v1311_v13 = vmul.f32 %v1992_v8, %v1310_v11 }
 0x216   :  { %v1312_v15 = vadd.f32 %v1992_v8, %v1311_v13 }
 0x217   :  { %v1994_v16 = vpop.eup %1993 }
 0x218   :  { %v1316_v18 = vsel %vm1315_vm4, %v1992_v8, %v1312_v15  ;;  %v1324_v19 = vmul.f32 %v1994_v16, %v1307_v9  ;;  %vm1329_vm6 = vweird.f32 %v1994_v16 }
 0x219   :  { %v1321_v20 = vsel %vm1318_vm5, %v1320_v17, %v1316_v18  ;;  %vm1330_vm8 = vmor %vm1328_vm7, %vm1329_vm6 }
 0x21a   :  { %1338 = vst [vmem:[%s2248_s7] sm:$0xff] %v1321_v20  ;;  %v1325_v21 = vsub.f32 1.0, %v1324_v19 }
 0x21c   :  { %v1326_v23 = vmul.f32 %v1994_v16, %v1325_v21 }
 0x21e   :  { %v1327_v26 = vadd.f32 %v1994_v16, %v1326_v23 }
 0x220   :  { %v1331_v28 = vsel %vm1330_vm8, %v1994_v16, %v1327_v26 }
 0x221   :  { %v1336_v29 = vsel %vm1333_vm9, %v1335_v27, %v1331_v28 }
 0x222   :  { %1339 = vst [vmem:[%s2248_s7 + $0x8] sm:$0xff] %v1336_v29 }
 0x223   :  { %1344 = vsyncpa [#allocation3], 1 }
 0x224   :  { %1345 = vsyncpa [#allocation5], 1 }
 0x225   :  { %1346 = vsyncpa [#allocation8], 1 }

</bundles_post_ra>
